<compile_context>
chip_gen: v5e
topology: v5e:2x2
jax: 0.10.0
libtpu: 0.0.40
codegen_flags: <defaults>
</compile_context>

<pallas_src>
import functools
import math

import jax
import jax.numpy as jnp
from jax import lax
from jax.experimental import pallas as pl
from jax.experimental.pallas import tpu as pltpu


# ----------------------------------------------------------------------------
# Tiled linear (y = x @ w + b)
# ----------------------------------------------------------------------------

def _linear_kernel(x_ref, w_ref, b_ref, o_ref, acc_ref):
    @pl.when(pl.program_id(2) == 0)
    def _():
        acc_ref[...] = jnp.zeros_like(acc_ref)

    acc_ref[...] += jnp.dot(x_ref[...], w_ref[...],
                            preferred_element_type=jnp.float32)

    @pl.when(pl.program_id(2) == pl.num_programs(2) - 1)
    def _():
        o_ref[...] = (acc_ref[...] + b_ref[...]).astype(o_ref.dtype)


def _pick_k_tile(K):
    # K is the reduction axis: its tile must divide K exactly (out-of-bounds
    # padding on a reduction axis would corrupt the accumulator).
    if K <= 1024:
        return K
    for tk in (1024, 512, 256, 128):
        if K % tk == 0:
            return tk
    return K


def linear(x2d, w, b):
    """x2d: [M, K], w: [K, N], b: [N] -> [M, N] (f32 accumulation)."""
    M, K = x2d.shape
    N = w.shape[1]
    tm = M if M <= 256 else 256
    tn = N if N <= 256 else 256
    tk = _pick_k_tile(K)
    grid = (pl.cdiv(M, tm), pl.cdiv(N, tn), pl.cdiv(K, tk))
    return pl.pallas_call(
        _linear_kernel,
        grid=grid,
        in_specs=[
            pl.BlockSpec((tm, tk), lambda i, j, k: (i, k)),
            pl.BlockSpec((tk, tn), lambda i, j, k: (k, j)),
            pl.BlockSpec((1, tn), lambda i, j, k: (0, j)),
        ],
        out_specs=pl.BlockSpec((tm, tn), lambda i, j, k: (i, j)),
        out_shape=jax.ShapeDtypeStruct((M, N), x2d.dtype),
        scratch_shapes=[pltpu.VMEM((tm, tn), jnp.float32)],
        compiler_params=pltpu.CompilerParams(
            dimension_semantics=("parallel", "parallel", "arbitrary")),
    )(x2d, w, b.reshape(1, N))


# ----------------------------------------------------------------------------
# Multi-head full attention (all heads per batch inside the kernel)
# ----------------------------------------------------------------------------

def _mha_kernel(q_ref, k_ref, v_ref, o_ref, *maybe_attn,
                n_heads, d_keys, d_values, scale):
    """q_ref: [1, L, H*E], k_ref: [1, S, H*E], v_ref: [1, S, H*Dv],
       o_ref: [1, L, H*Dv], optional attn ref: [1, H, L, S]."""
    q = q_ref[0].astype(jnp.float32)   # (L, H*E)
    k = k_ref[0].astype(jnp.float32)   # (S, H*E)
    v = v_ref[0].astype(jnp.float32)   # (S, H*Dv)

    outs = []
    for h in range(n_heads):           # static unroll; H is small
        qh = q[:, h * d_keys:(h + 1) * d_keys] * scale       # fold 1/sqrt(E) into Q
        kh = k[:, h * d_keys:(h + 1) * d_keys]
        vh = v[:, h * d_values:(h + 1) * d_values]

        # Contract the E axes directly -> no materialized K^T (saves XLU work).
        scores = lax.dot_general(qh, kh, (((1,), (1,)), ((), ())),
                                 preferred_element_type=jnp.float32)  # (L, S)

        m = jnp.max(scores, axis=-1, keepdims=True)
        p = jnp.exp(scores - m)
        denom = jnp.sum(p, axis=-1, keepdims=True)
        probs = p * pl.reciprocal(denom, approx=True)                 # (L, S)

        if maybe_attn:
            maybe_attn[0][0, h] = probs.astype(maybe_attn[0].dtype)

        outs.append(jnp.dot(probs, vh, preferred_element_type=jnp.float32))

    # Single lane-dense store of all heads at once.
    o_ref[0] = jnp.concatenate(outs, axis=-1).astype(o_ref.dtype)


def _attention_pallas_call(B, L, S, H, E, Dv, dtype, in_specs, output_attention):
    HDv = H * Dv
    kernel = functools.partial(_mha_kernel, n_heads=H, d_keys=E, d_values=Dv,
                               scale=1.0 / math.sqrt(E))
    out_shape = [jax.ShapeDtypeStruct((B, L, HDv), dtype)]
    out_specs = [pl.BlockSpec((1, L, HDv), lambda b: (b, 0, 0))]
    if output_attention:
        out_shape.append(jax.ShapeDtypeStruct((B, H, L, S), jnp.float32))
        out_specs.append(pl.BlockSpec((1, H, L, S), lambda b: (b, 0, 0, 0)))
    return pl.pallas_call(
        kernel,
        grid=(B,),
        in_specs=in_specs,
        out_specs=out_specs,
        out_shape=out_shape,
        compiler_params=pltpu.CompilerParams(
            dimension_semantics=("parallel",)),
    )


def multi_head_attention(q, k, v, H, E, Dv, output_attention=True):
    """q: [B, L, H*E], k: [B, S, H*E], v: [B, S, H*Dv]."""
    B, L, _ = q.shape
    S = k.shape[1]
    in_specs = [
        pl.BlockSpec((1, L, H * E), lambda b: (b, 0, 0)),
        pl.BlockSpec((1, S, H * E), lambda b: (b, 0, 0)),
        pl.BlockSpec((1, S, H * Dv), lambda b: (b, 0, 0)),
    ]
    call = _attention_pallas_call(B, L, S, H, E, Dv, q.dtype, in_specs,
                                  output_attention)
    res = call(q, k, v)
    if output_attention:
        return res[0], res[1]
    return res[0], None


def multi_head_attention_fused_qkv(qkv, L, H, E, output_attention=True):
    """Self-attention fast path: qkv [B, L, 3*H*E] (Q|K|V segments along features).
    Requires d_keys == d_values and (H*E) % 128 == 0 so each segment is a
    lane-aligned block; BlockSpecs slice the segments directly (no XLA split)."""
    B = qkv.shape[0]
    HE = H * E
    in_specs = [
        pl.BlockSpec((1, L, HE), lambda b: (b, 0, 0)),   # Q columns [0, HE)
        pl.BlockSpec((1, L, HE), lambda b: (b, 0, 1)),   # K columns [HE, 2HE)
        pl.BlockSpec((1, L, HE), lambda b: (b, 0, 2)),   # V columns [2HE, 3HE)
    ]
    call = _attention_pallas_call(B, L, L, H, E, E, qkv.dtype, in_specs,
                                  output_attention)
    res = call(qkv, qkv, qkv)
    if output_attention:
        return res[0], res[1]
    return res[0], None


# ----------------------------------------------------------------------------
# AttentionLayer wrapper
# ----------------------------------------------------------------------------

class AttentionLayerPallas:
    def __init__(self, d_model, n_heads, d_keys=None, d_values=None,
                 mix=False, output_attention=True, key=None):
        d_keys = d_keys or d_model // n_heads
        d_values = d_values or d_model // n_heads
        self.d_model = d_model
        self.n_heads = n_heads
        self.d_keys = d_keys
        self.d_values = d_values
        self.mix = mix
        self.output_attention = output_attention

        key = key if key is not None else jax.random.PRNGKey(0)
        ks = jax.random.split(key, 8)

        def init_linear(kw, kb, in_f, out_f):
            bound = 1.0 / math.sqrt(in_f)
            w = jax.random.uniform(kw, (in_f, out_f), jnp.float32, -bound, bound)
            b = jax.random.uniform(kb, (out_f,), jnp.float32, -bound, bound)
            return w, b

        self.wq, self.bq = init_linear(ks[0], ks[1], d_model, d_keys * n_heads)
        self.wk, self.bk = init_linear(ks[2], ks[3], d_model, d_keys * n_heads)
        self.wv, self.bv = init_linear(ks[4], ks[5], d_model, d_values * n_heads)
        self.wo, self.bo = init_linear(ks[6], ks[7], d_values * n_heads, d_model)
        # Fused QKV weights for the self-attention fast path.
        self.w_qkv = jnp.concatenate([self.wq, self.wk, self.wv], axis=1)
        self.b_qkv = jnp.concatenate([self.bq, self.bk, self.bv], axis=0)

    def __call__(self, queries, keys, values, attn_mask=None):
        # TODO(synk): attn_mask unused (FullAttention with mask_flag=False).
        B, L, _ = queries.shape
        _, S, _ = keys.shape
        H, E, Dv = self.n_heads, self.d_keys, self.d_values

        self_attn = (queries is keys) and (queries is values)
        if self_attn:
            # Fused QKV projection: one HBM pass over the activation, 3x wider N.
            qkv2d = linear(queries.reshape(B * L, self.d_model),
                           self.w_qkv, self.b_qkv)
            if E == Dv and (H * E) % 128 == 0:
                qkv = qkv2d.reshape(B, L, 3 * H * E)
                out, attn = multi_head_attention_fused_qkv(
                    qkv, L, H, E, self.output_attention)
            else:
                q = qkv2d[:, :H * E].reshape(B, L, H * E)
                k = qkv2d[:, H * E:2 * H * E].reshape(B, L, H * E)
                v = qkv2d[:, 2 * H * E:].reshape(B, L, H * Dv)
                out, attn = multi_head_attention(
                    q, k, v, H, E, Dv, self.output_attention)
        else:
            q = linear(queries.reshape(B * L, self.d_model),
                       self.wq, self.bq).reshape(B, L, H * E)
            k = linear(keys.reshape(B * S, self.d_model),
                       self.wk, self.bk).reshape(B, S, H * E)
            v = linear(values.reshape(B * S, self.d_model),
                       self.wv, self.bv).reshape(B, S, H * Dv)
            out, attn = multi_head_attention(
                q, k, v, H, E, Dv, self.output_attention)

        if self.mix:
            # Match PyTorch: out.view(B,L,H,Dv).transpose(2,1).contiguous().view(B,L,-1)
            out = (out.reshape(B, L, H, Dv)
                      .transpose(0, 2, 1, 3)
                      .reshape(B, L, H * Dv))

        out2d = linear(out.reshape(B * L, H * Dv), self.wo, self.bo)
        return out2d.reshape(B, L, self.d_model), attn


# ----------------------------------------------------------------------------
# Pure-jnp reference
# ----------------------------------------------------------------------------

def reference_forward(layer, queries, keys, values):
    B, L, _ = queries.shape
    _, S, _ = keys.shape
    H, E, Dv = layer.n_heads, layer.d_keys, layer.d_values
    q = (queries @ layer.wq + layer.bq).reshape(B, L, H, E)
    k = (keys @ layer.wk + layer.bk).reshape(B, S, H, E)
    v = (values @ layer.wv + layer.bv).reshape(B, S, H, Dv)
    scores = jnp.einsum("blhe,bshe->bhls", q, k) / math.sqrt(E)
    attn = jax.nn.softmax(scores, axis=-1)
    out = jnp.einsum("bhls,bshd->blhd", attn, v)
    if layer.mix:
        out = jnp.swapaxes(out, 1, 2)
    out = out.reshape(B, L, H * Dv)
    return out @ layer.wo + layer.bo, attn


# ----------------------------------------------------------------------------
# Main
# ----------------------------------------------------------------------------

if __name__ == "__main__":
    root = jax.random.PRNGKey(0)
    k_x, k_q, k_k, k_v, k_p1, k_p2 = jax.random.split(root, 6)

    # --- Test 1: self-attention, lane-aligned fused QKV direct-index path ----
    B, L, d_model, n_heads = 2, 8, 128, 4
    x = jax.random.normal(k_x, (B, L, d_model), jnp.float32)
    layer1 = AttentionLayerPallas(d_model, n_heads, mix=False,
                                  output_attention=True, key=k_p1)
    out1, attn1 = layer1(x, x, x, attn_mask=None)
    out1 = jax.block_until_ready(out1)
    attn1 = jax.block_until_ready(attn1)
    ref_out1, ref_attn1 = reference_forward(layer1, x, x, x)
    assert out1.shape == (B, L, d_model)
    assert attn1.shape == (B, n_heads, L, L)
    assert jnp.allclose(out1, ref_out1, atol=5e-3, rtol=5e-3)
    assert jnp.allclose(attn1, ref_attn1, atol=2e-3, rtol=2e-3)

    # output_attention=False path (same weights via same key) -> attn is None.
    layer1b = AttentionLayerPallas(d_model, n_heads, mix=False,
                                   output_attention=False, key=k_p1)
    out1b, attn1b = layer1b(x, x, x, attn_mask=None)
    out1b = jax.block_until_ready(out1b)
    assert attn1b is None
    assert jnp.allclose(out1b, ref_out1, atol=5e-3, rtol=5e-3)

    # --- Test 2: cross-attention (distinct q/k/v), small d_model ------------
    B2, L2, S2, d_model2, n_heads2 = 2, 8, 16, 32, 4
    queries = jax.random.normal(k_q, (B2, L2, d_model2), jnp.float32)
    keys = jax.random.normal(k_k, (B2, S2, d_model2), jnp.float32)
    values = jax.random.normal(k_v, (B2, S2, d_model2), jnp.float32)
    layer2 = AttentionLayerPallas(d_model2, n_heads2, mix=False,
                                  output_attention=True, key=k_p2)
    out2, attn2 = layer2(queries, keys, values, attn_mask=None)
    out2 = jax.block_until_ready(out2)
    attn2 = jax.block_until_ready(attn2)
    ref_out2, ref_attn2 = reference_forward(layer2, queries, keys, values)
    assert out2.shape == (B2, L2, d_model2)
    assert attn2.shape == (B2, n_heads2, L2, S2)
    assert jnp.allclose(out2, ref_out2, atol=5e-3, rtol=5e-3)
    assert jnp.allclose(attn2, ref_attn2, atol=2e-3, rtol=2e-3)

    print("KERNEL_OK")
</pallas_src>

<mosaic_0001>
module attributes {stable_mosaic.version = 11 : i64} {
  func.func @_linear_kernel(%arg0: i32, %arg1: i32, %arg2: i32, %arg3: memref<16x128xf32, #tpu.memory_space<vmem>>, %arg4: memref<128x256xf32, #tpu.memory_space<vmem>>, %arg5: memref<1x256xf32, #tpu.memory_space<vmem>>, %arg6: memref<16x256xf32, #tpu.memory_space<vmem>>, %arg7: memref<16x256xf32, #tpu.memory_space<vmem>>) attributes {dimension_semantics = [#tpu.dimension_semantics<parallel>, #tpu.dimension_semantics<parallel>, #tpu.dimension_semantics<arbitrary>], iteration_bounds = array<i64: 1, 2, 1>, scalar_prefetch = 0 : i64, scratch_operands = 1 : i64, tpu.core_type = #tpu.core_type<tc>, window_params = [{transform_indices = @transform_0, window_bounds = array<i64: 16, 128>}, {transform_indices = @transform_1, window_bounds = array<i64: 128, 256>}, {transform_indices = @transform_2, window_bounds = array<i64: 1, 256>}, {transform_indices = @transform_3, window_bounds = array<i64: 16, 256>}]} {
    %c0_i32 = arith.constant 0 : i32
    %0 = arith.cmpi eq, %arg2, %c0_i32 : i32
    %1 = arith.extui %0 : i1 to i32
    %c0_i32_0 = arith.constant 0 : i32
    %2 = arith.cmpi ne, %1, %c0_i32_0 : i32
    scf.if %2 {
      %cst_10 = arith.constant 0.000000e+00 : f32
      %12 = vector.broadcast %cst_10 : f32 to vector<16x256xf32>
      %c0_11 = arith.constant 0 : index
      %c0_12 = arith.constant 0 : index
      %13 = vector.load %arg7[%c0_11, %c0_12] : memref<16x256xf32, #tpu.memory_space<vmem>>, vector<16x256xf32>
      tpu.vector_store %arg7[%c0_11, %c0_12], %12 {strides = array<i32>} : memref<16x256xf32, #tpu.memory_space<vmem>>, vector<16x256xf32>,
    } else {
    }
    %c0 = arith.constant 0 : index
    %c0_1 = arith.constant 0 : index
    %3 = vector.load %arg7[%c0, %c0_1] : memref<16x256xf32, #tpu.memory_space<vmem>>, vector<16x256xf32>
    %c0_2 = arith.constant 0 : index
    %c0_3 = arith.constant 0 : index
    %4 = vector.load %arg3[%c0_2, %c0_3] : memref<16x128xf32, #tpu.memory_space<vmem>>, vector<16x128xf32>
    %c0_4 = arith.constant 0 : index
    %c0_5 = arith.constant 0 : index
    %5 = vector.load %arg4[%c0_4, %c0_5] : memref<128x256xf32, #tpu.memory_space<vmem>>, vector<128x256xf32>
    %cst = arith.constant dense<0.000000e+00> : vector<16x256xf32>
    %6 = tpu.matmul %4, %5, %cst {dimension_numbers = #tpu.dot_dimension_numbers<[1], [0], [0], [1], [0, 0, 1, 1], [], []>} : vector<16x128xf32>, vector<128x256xf32>, vector<16x256xf32> -> vector<16x256xf32>
    %7 = arith.addf %3, %6 : vector<16x256xf32>
    %c0_6 = arith.constant 0 : index
    %c0_7 = arith.constant 0 : index
    %8 = vector.load %arg7[%c0_6, %c0_7] : memref<16x256xf32, #tpu.memory_space<vmem>>, vector<16x256xf32>
    tpu.vector_store %arg7[%c0_6, %c0_7], %7 {strides = array<i32>} : memref<16x256xf32, #tpu.memory_space<vmem>>, vector<16x256xf32>,
    %c0_i32_8 = arith.constant 0 : i32
    %9 = arith.cmpi eq, %arg2, %c0_i32_8 : i32
    %10 = arith.extui %9 : i1 to i32
    %c0_i32_9 = arith.constant 0 : i32
    %11 = arith.cmpi ne, %10, %c0_i32_9 : i32
    scf.if %11 {
      %c0_10 = arith.constant 0 : index
      %c0_11 = arith.constant 0 : index
      %12 = vector.load %arg7[%c0_10, %c0_11] : memref<16x256xf32, #tpu.memory_space<vmem>>, vector<16x256xf32>
      %c0_12 = arith.constant 0 : index
      %c0_13 = arith.constant 0 : index
      %13 = vector.load %arg5[%c0_12, %c0_13] : memref<1x256xf32, #tpu.memory_space<vmem>>, vector<1x256xf32>
      %14 = vector.broadcast %13 : vector<1x256xf32> to vector<16x256xf32>
      %15 = arith.addf %12, %14 : vector<16x256xf32>
      %c0_14 = arith.constant 0 : index
      %c0_15 = arith.constant 0 : index
      %16 = vector.load %arg6[%c0_14, %c0_15] : memref<16x256xf32, #tpu.memory_space<vmem>>, vector<16x256xf32>
      tpu.vector_store %arg6[%c0_14, %c0_15], %15 {strides = array<i32>} : memref<16x256xf32, #tpu.memory_space<vmem>>, vector<16x256xf32>,
    } else {
    }
    return
  }
  func.func @transform_0(%arg0: i32, %arg1: i32, %arg2: i32) -> (i32, i32) {
    %c0_i32 = arith.constant 0 : i32
    return %arg0, %arg2 : i32, i32
  }
  func.func @transform_1(%arg0: i32, %arg1: i32, %arg2: i32) -> (i32, i32) {
    %c0_i32 = arith.constant 0 : i32
    return %arg2, %arg1 : i32, i32
  }
  func.func @transform_2(%arg0: i32, %arg1: i32, %arg2: i32) -> (i32, i32) {
    %c0_i32 = arith.constant 0 : i32
    %c0_i32_0 = arith.constant 0 : i32
    return %c0_i32, %arg1 : i32, i32
  }
  func.func @transform_3(%arg0: i32, %arg1: i32, %arg2: i32) -> (i32, i32) {
    %c0_i32 = arith.constant 0 : i32
    return %arg0, %arg1 : i32, i32
  }
}

</mosaic_0001>

<bundles_post_ra>
// kernel: tpu_custom_call.1
= control target key start
LH: loop header
LB: loop body
LE: loop exit
PB: predicated region body
PF: predicated region fallthrough
CT: control target
= control target key end

     0   :  { %s1225_s0 = inlined_call_operand.hbm [shape: f32[16,128], index: 0, kind: input, shape index: {}]   ;;  %s1226_s1 = inlined_call_operand.hbm [shape: f32[128,384], index: 1, kind: input, shape index: {}]   ;;  %s1227_s2 = inlined_call_operand.hbm [shape: f32[1,384], index: 2, kind: input, shape index: {}]   ;;  %s1228_s3 = inlined_call_operand.hbm [shape: f32[16,384], index: 3, kind: output, shape index: {}]  }
   0x1   :  { %1233 = sst [smem:[#allocation16_spill]] %s1225_s0 }
   0x2   :  { %8 = vsyncpa [#allocation4], 0 }
   0x3   :  { %9 = vsyncpa [#allocation7], 0 }
   0x4   :  { %11 = vsyncpa [#allocation7 + $0x1], 0 }
   0x5   :  { %12 = vsyncpa [#allocation5], 0 }
   0x6   :  { %14 = vsyncpa [#allocation5 + $0x1], 0  ;;  %s964_s12 = smov 0   ;;  %s966_s13 = smov 0  }
   0x7   :  { %s968_s14 = smov 0   ;;  %s970_s15 = smov 0  }
   0x8   :  { %s972_s16 = smov 0   ;;  %s974_s17 = smov 0  }
   0x9 LB: > { %s995_s18 = sadd.s32 4294967295, %s932_s17   ;;  %s586_s19 = sadd.s32 4294967294, %s932_s17   ;;  %s932_s17 = sphi %s974_s17, %s20_s17   ;;  %s928_s16 = sphi %s972_s16, %s1255_s16   ;;  %s924_s15 = sphi %s970_s15, %s1254_s15   ;;  %s920_s14 = sphi %s968_s14, %s1253_s14   ;;  %s916_s13 = sphi %s966_s13, %s1252_s13   ;;  %s912_s12 = sphi %s964_s12, %s1251_s12  }
   0xa   : > { %s35_s20 = sadd.s32 1, %s928_s16  ;;  %s76_s21 = sadd.s32 1, %s920_s14 }
   0xb   : > { %p37_p0 = scmp.ge.s32.totalorder %s35_s20, 2  ;;  %p83_p1 = scmp.ne.s32.totalorder %s920_s14, %s916_s13 }
   0xc   : > { %p84_p2 = scmp.eq.s32.totalorder %s932_s17, 0  ;;  %p89_p3 = scmp.ne.s32.totalorder %s916_s13, %s912_s12 }
   0xd   : > { %s1257_s20 = smov (%p37_p0, %s35_s20), 0  ;;  %p1232_p5 = scmp.eq.s32.totalorder %s995_s18, 0 }
   0xe   : > { %1234 = sst [smem:[#allocation13_spill]] %s1257_s20  ;;  %p1007_p4 = por %p84_p2, %p83_p1 }
   0xf   : > { %s72_s23 = ssub.s32 %s928_s16, %s1257_s20  ;;  %p141_p6 = scmp.eq.s32.totalorder %s995_s18, 1 }
  0x10   : > { %p74_p7 = scmp.eq.s32.totalorder %s72_s23, 0  ;;  %p1017_p8 = por %p1232_p5, %p89_p3 }
  0x11   : > { %p1021_p9 = por %p141_p6, %p83_p1  ;;  %p147_p10 = scmp.eq.s32.totalorder %s586_s19, 1 }
  0x12   : > { %s1026_s26 = scalar_select %p74_p7, %s920_s14, %s76_s21  }
  0x13   : > { %p1028_p11 = por %p147_p10, %p89_p3  ;;  %p587_p12 = scmp.ge.s32.totalorder %s932_s17, 1 }
  0x14   : > { %1238 = sst [smem:[#allocation14_spill]] %s1026_s26  ;;  %p154_p13 = scmp.lt.s32.totalorder %s932_s17, 3 }
  0x15   : > { %s1239_s27 = scalar_select %p1028_p11, 1, 0 }
  0x16   : > { %s1241_s0 = sld [smem:[#allocation16_spill]]  ;;  %p1037_p0 = pnand %p587_p12, %p154_p13 }
  0x17   : > { %1240 = sst [smem:[#allocation15_spill]] %s1239_s27  ;;  %s934_s5 = smov [#allocation3]  }
  0x18   : > { %s171_s6 = sshll.u32 %s934_s5, 4  ;;  %p661_p1 = pneg %p1037_p0  ;;  %s172_s6 = int_to_ptr.vmem [resolvable:$true] %s171_s6 }
  0x19   : > { %s935_s7 = smov 128   ;;  %s936_s8 = smov 8  }
  0x1a   : > { %p662_p2 = pnand %p661_p1, %p1232_p5  ;;  %p1231_p3 = scmp.ge.s32.totalorder %s932_s17, 2 }
  0x1c   : > { %s169_s30 = sshll.u32 %s1241_s0, 4  ;;  %181 = sbr.rel (%p1231_p3) target bundleno = 93 (0x5d), region = 20  ;;  %s170_s30 = int_to_ptr.hbm [resolvable:$true] %s169_s30 }
  0x1d   : > { %664 = dma.hbm_to_vmem [thread:$0]  (!%p662_p2), %s170_s30, 256, %s172_s6, [#allocation4], %s935_s7, %s935_s7, %s936_s8  }
  0x21   : > { %184 = sbr.rel (!%p1007_p4) target bundleno = 59 (0x3b), region = 24  ;;  %s185_s9 = sand.u32 (%p1007_p4), 1, %s932_s17  }
  0x22   : > { %s187_s10 = sand.u32 (%p1007_p4), 1, %s920_s14   ;;  %s591_s19 = sshll.u32 (%p1007_p4), %s928_s16, 1 }
  0x23   : > { %s590_s11 = sshll.u32 (%p1007_p4), %s187_s10, 8  ;;  %s192_s21 = ssub.s32 (%p1007_p4), 3, %s591_s19 }
  0x24   : > { %p193_p6 = scmp.lt.s32.totalorder (%p1007_p4), %s192_s21, 2  ;;  %s1056_s30 = scalar_lea.sflag (%p1007_p4), [#allocation7], %s185_s9 }
  0x25   : > { %s189_s5 = scalar_lea.vmem (%p1007_p4), [#allocation6], %s590_s11 }
  0x26   : > { %s1259_s21 = smov (!%p193_p6, %s192_s21), 2 }
  0x27   : > { %s592_s23 = sshll.u32 %s1259_s21, 7 }
  0x28   : > { %s196_s28 = ssub.s32 256, %s592_s23 }
  0x29   : > { %s197_s29 = sshll.u32 %s196_s28, 4 }
  0x2a   : > { %198 = vsyncadd %s1056_s30, %s197_s29  ;;  %p1059_p7 = scmp.ne.s32.totalorder %s592_s23, 0  ;;  %s616_s7 = sshll.u32 %s928_s16, 4 }
  0x2b   : > { %s203_s19 = scalar_lea.hbm %s1226_s1, %s616_s7  ;;  %s595_s0 = sshll.u32 %s1259_s21, 3 }
  0x2c   : > { %s206_s28 = sshll.u32 %s203_s19, 4  ;;  %s208_s9 = sshll.u32 %s189_s5, 4  ;;  %s207_s28 = int_to_ptr.hbm [resolvable:$true] %s206_s28  ;;  %s209_s9 = int_to_ptr.vmem [resolvable:$true] %s208_s9 }
  0x2d   : > { %s618_s11 = sshll.u32 %s1259_s21, 11  ;;  %s776_s20 = sshra.s32 %s209_s9, 4  ;;  %s777_s20 = int_to_ptr.vmem [resolvable:$true] %s776_s20 }
  0x2e   : > { %s759_s29 = sshrl.u32 %s618_s11, 4  ;;  %s937_s23 = smov [#allocation6]  }
  0x2f   : > { %s783_s26 = scalar_lea.vmem %s777_s20, %s759_s29  ;;  %s787_s27 = scalar_lea.vmem %s937_s23, 512 }
  0x30   : > { %p784_p10 = scmp.ne.s32.totalorder %s777_s20, %s783_s26  ;;  %p789_p1 = scmp.lt.s32.totalorder %s787_s27, %s783_s26 }
  0x32   : > { %p785_p12 = pnand %p784_p10, %p1059_p7 }
  0x34   : > { %p786_p13 = pneg %p785_p12 }
  0x36   : > { %p791_p2 = pnand %p789_p1, %p786_p13 }
  0x38   : > { %794 = shalt.err (!%p791_p2)
}
  0x39   : > { %s938_s7 = smov 384   ;;  %s939_s5 = smov 256  }
  0x3a   : > { %214 = dma.hbm_to_vmem [thread:$0]  (%p1059_p7), %s207_s28, %s618_s11, %s209_s9, %s1056_s30, %s938_s7, %s939_s5, %s595_s0  }
  0x3b PF: > { %217 = sbr.rel (!%p1007_p4) target bundleno = 93 (0x5d), region = 28  ;;  %s218_s20 = sand.u32 (%p1007_p4), 1, %s932_s17  }
  0x3c   : > { %s220_s21 = sand.u32 (%p1007_p4), 1, %s920_s14   ;;  %s599_s10 = sshll.u32 (%p1007_p4), %s928_s16, 1 }
  0x3d   : > { %s598_s8 = sshll.u32 (%p1007_p4), %s220_s21, 1  ;;  %s224_s26 = ssub.s32 (%p1007_p4), 3, %s599_s10 }
  0x3e   : > { %p225_p6 = scmp.lt.s32.totalorder (%p1007_p4), %s224_s26, 2  ;;  %s1082_s6 = scalar_lea.sflag (%p1007_p4), [#allocation7], %s218_s20 }
  0x3f   : > { %s222_s0 = scalar_lea.vmem (%p1007_p4), [#allocation8], %s598_s8 }
  0x40   : > { %s1261_s26 = smov (!%p225_p6, %s224_s26), 2 }
  0x41   : > { %s227_s27 = ssub.s32 2, %s1261_s26 }
  0x42   : > { %s228_s19 = sshll.u32 %s227_s27, 4 }
  0x43   : > { %229 = vsyncadd %s1082_s6, %s228_s19  ;;  %p600_p4 = scmp.ne.s32.totalorder %s1261_s26, 0  ;;  %s231_s28 = scalar_lea.hbm %s1227_s2, %s599_s10 }
  0x44   : > { %s232_s9 = sshll.u32 %s1261_s26, 4  ;;  %s233_s11 = sshll.u32 %s231_s28, 4  ;;  %s234_s11 = int_to_ptr.hbm [resolvable:$true] %s233_s11 }
  0x45   : > { %s235_s29 = sshll.u32 %s222_s0, 4  ;;  %s796_s23 = sshra.s32 %s234_s11, 4  ;;  %s236_s29 = int_to_ptr.vmem [resolvable:$true] %s235_s29  ;;  %s797_s23 = int_to_ptr.hbm [resolvable:$true] %s796_s23 }
  0x46   : > { %s798_s7 = sshrl.u32 %s232_s9, 4  ;;  %s807_s8 = scalar_lea.hbm %s1227_s2, 3 }
  0x47   : > { %s803_s5 = scalar_lea.hbm %s797_s23, %s798_s7 }
  0x48   : > { %p804_p7 = scmp.ne.s32.totalorder %s797_s23, %s803_s5  ;;  %p809_p13 = scmp.lt.s32.totalorder %s807_s8, %s803_s5 }
  0x4a   : > { %p805_p10 = pnand %p804_p7, %p600_p4 }
  0x4c   : > { %p806_p12 = pneg %p805_p10 }
  0x4e   : > { %p811_p1 = pnand %p809_p13, %p806_p12 }
  0x50   : > { %814 = shalt.err (!%p811_p1)
}
  0x51   : > { %s815_s10 = sshra.s32 %s236_s29, 4  ;;  %s940_s19 = smov [#allocation8]   ;;  %s816_s10 = int_to_ptr.vmem [resolvable:$true] %s815_s10 }
  0x52   : > { %s822_s27 = scalar_lea.vmem %s816_s10, %s798_s7  ;;  %s826_s0 = scalar_lea.vmem %s940_s19, 4 }
  0x53   : > { %p823_p2 = scmp.ne.s32.totalorder %s816_s10, %s822_s27  ;;  %p828_p5 = scmp.lt.s32.totalorder %s826_s0, %s822_s27 }
  0x55   : > { %p824_p6 = pnand %p823_p2, %p600_p4 }
  0x57   : > { %p825_p3 = pneg %p824_p6 }
  0x59   : > { %p830_p7 = pnand %p828_p5, %p825_p3 }
  0x5b   : > { %833 = shalt.err (!%p830_p7)
}
  0x5c   : > { %238 = dma.hbm_to_vmem [thread:$0]  (%p600_p4), %s234_s11, %s232_s9, %s236_s29, %s1082_s6  }
  0x5d PF: > { %244 = sbr.rel (%p1037_p0) target bundleno = 303 (0x12f), region = 32  ;;  %p1244_p10 = scmp.eq.s32.totalorder (!%p1037_p0), %s995_s18, 0 }
  0x62   : > { %899 = dma.done.wait (%p1244_p10), [#allocation4], 256   ;;  %p1245_p12 = pmov %p1244_p10 }
  0x63   : > { %s251_s22 = sand.u32 1, %s995_s18   ;;  %s1112_s30 = sand.u32 1, %s916_s13  }
  0x64   : > { %901 = vsyncadd (%p1245_p12), [#allocation4], 4294967040  ;;  %s603_s26 = sshll.u32 %s1112_s30, 8  ;;  %s252_s6 = scalar_lea.sflag [#allocation7], %s251_s22 }
  0x65   : > { %s1115_s28 = scalar_lea.vmem [#allocation6], %s603_s26 }
  0x66   : > { %903 = dma.done.wait (%p1017_p8), %s252_s6, 4128  }
  0x67   : > { %905 = vsyncadd (%p1017_p8), %s252_s6, 4294963168  ;;  %v355_v0 = vld [vmem:[%s1115_s28 + $0xf0] sm:$0xff]  ;;  %v356_v1 = vld [vmem:[%s1115_s28 + $0xf8] sm:$0xff]  ;;  %s604_s18 = sshll.u32 %s1112_s30, 1  ;;  %s605_s4 = sshll.u32 %s1112_s30, 5 }
  0x68   : > { %v353_v2 = vld [vmem:[%s1115_s28 + $0xe0] sm:$0xff]  ;;  %622 = vmatpush.msra.mxu2 %v355_v0  ;;  %638 = vmatpush.msra.mxu3 %v356_v1  ;;  %v354_v3 = vld [vmem:[%s1115_s28 + $0xe8] sm:$0xff]  ;;  %v351_v4 = vld [vmem:[%s1115_s28 + $0xd0] sm:$0xff]  ;;  %s265_s24 = scalar_lea.vmem [#allocation8], %s604_s18  ;;  %s293_s9 = scalar_lea.vmem [#allocation9], %s605_s4 }
  0x69   : > { %v352_v5 = vld [vmem:[%s1115_s28 + $0xd8] sm:$0xff]  ;;  %357 = vmatpush.msra.mxu0 %v355_v0  ;;  %380 = vmatpush.msra.mxu1 %v356_v1  ;;  %v349_v6 = vld [vmem:[%s1115_s28 + $0xc0] sm:$0xff]  ;;  %v350_v7 = vld [vmem:[%s1115_s28 + $0xc8] sm:$0xff]  ;;  %s433_s11 = scalar_lea.sflag [#allocation5], %s1112_s30  ;;  %s607_s29 = sshll.u32 (%p1021_p9), %s924_s15, 1 }
  0x6a   : > { %623 = vmatpush.msra.mxu2 %v353_v2  ;;  %639 = vmatpush.msra.mxu3 %v354_v3  ;;  %v347_v8 = vld [vmem:[%s1115_s28 + $0xb0] sm:$0xff]  ;;  %v348_v9 = vld [vmem:[%s1115_s28 + $0xb8] sm:$0xff]  ;;  %v345_v10 = vld [vmem:[%s1115_s28 + $0xa0] sm:$0xff]  ;;  %s442_s23 = ssub.s32 (%p1021_p9), 3, %s607_s29 }
  0x6b   : > { %358 = vmatpush.msra.mxu0 %v353_v2  ;;  %381 = vmatpush.msra.mxu1 %v354_v3  ;;  %v346_v11 = vld [vmem:[%s1115_s28 + $0xa8] sm:$0xff]  ;;  %v343_v12 = vld [vmem:[%s1115_s28 + $0x90] sm:$0xff]  ;;  %v344_v13 = vld [vmem:[%s1115_s28 + $0x98] sm:$0xff]  ;;  %p443_p5 = scmp.lt.s32.totalorder (%p1021_p9), %s442_s23, 2 }
  0x6c   : > { %624 = vmatpush.msra.mxu2 %v351_v4  ;;  %640 = vmatpush.msra.mxu3 %v352_v5  ;;  %v341_v14 = vld [vmem:[%s1115_s28 + $0x80] sm:$0xff]  ;;  %v342_v15 = vld [vmem:[%s1115_s28 + $0x88] sm:$0xff]  ;;  %v339_v16 = vld [vmem:[%s1115_s28 + $0x70] sm:$0xff] }
  0x6d   : > { %359 = vmatpush.msra.mxu0 %v351_v4  ;;  %382 = vmatpush.msra.mxu1 %v352_v5  ;;  %v340_v17 = vld [vmem:[%s1115_s28 + $0x78] sm:$0xff]  ;;  %v337_v18 = vld [vmem:[%s1115_s28 + $0x60] sm:$0xff]  ;;  %v338_v19 = vld [vmem:[%s1115_s28 + $0x68] sm:$0xff] }
  0x6e   : > { %625 = vmatpush.msra.mxu2 %v349_v6  ;;  %641 = vmatpush.msra.mxu3 %v350_v7  ;;  %v335_v20 = vld [vmem:[%s1115_s28 + $0x50] sm:$0xff]  ;;  %v336_v21 = vld [vmem:[%s1115_s28 + $0x58] sm:$0xff]  ;;  %v333_v22 = vld [vmem:[%s1115_s28 + $0x40] sm:$0xff] }
  0x6f   : > { %360 = vmatpush.msra.mxu0 %v349_v6  ;;  %383 = vmatpush.msra.mxu1 %v350_v7  ;;  %v334_v23 = vld [vmem:[%s1115_s28 + $0x48] sm:$0xff]  ;;  %v331_v24 = vld [vmem:[%s1115_s28 + $0x30] sm:$0xff]  ;;  %v332_v25 = vld [vmem:[%s1115_s28 + $0x38] sm:$0xff] }
  0x70   : > { %626 = vmatpush.msra.mxu2 %v347_v8  ;;  %642 = vmatpush.msra.mxu3 %v348_v9  ;;  %v329_v26 = vld [vmem:[%s1115_s28 + $0x20] sm:$0xff]  ;;  %v330_v27 = vld [vmem:[%s1115_s28 + $0x28] sm:$0xff]  ;;  %v327_v28 = vld [vmem:[%s1115_s28 + $0x10] sm:$0xff] }
  0x71   : > { %361 = vmatpush.msra.mxu0 %v347_v8  ;;  %384 = vmatpush.msra.mxu1 %v348_v9  ;;  %v328_v29 = vld [vmem:[%s1115_s28 + $0x18] sm:$0xff]  ;;  %v325_v30 = vld [vmem:[%s1115_s28] sm:$0xff]  ;;  %v326_v31 = vld [vmem:[%s1115_s28 + $0x8] sm:$0xff] }
  0x72   : > { %627 = vmatpush.msra.mxu2 %v345_v10  ;;  %643 = vmatpush.msra.mxu3 %v346_v11  ;;  %v324_v32 = vld [vmem:[#allocation3 + $0x8] sm:$0xff]  ;;  %v323_v33 = vld [vmem:[#allocation3] sm:$0xff]  ;;  %v418_v34 = vld [vmem:[%s265_s24] sm:$0x3] }
  0x73   : > { %362 = vmatpush.msra.mxu0 %v345_v10  ;;  %385 = vmatpush.msra.mxu1 %v346_v11  ;;  %v420_v35 = vperm.slane %v418_v34, 0  ;;  %v421_v36 = vperm.slane %v418_v34, 1 }
  0x74   : > { %628 = vmatpush.msra.mxu2 %v343_v12  ;;  %644 = vmatpush.msra.mxu3 %v344_v13 }
  0x75   : > { %363 = vmatpush.msra.mxu0 %v343_v12  ;;  %386 = vmatpush.msra.mxu1 %v344_v13 }
  0x76   : > { %629 = vmatpush.msra.mxu2 %v341_v14  ;;  %645 = vmatpush.msra.mxu3 %v342_v15 }
  0x77   : > { %364 = vmatpush.msra.mxu0 %v341_v14  ;;  %387 = vmatpush.msra.mxu1 %v342_v15 }
  0x78   : > { %630 = vmatpush.msra.mxu2 %v339_v16  ;;  %646 = vmatpush.msra.mxu3 %v340_v17 }
  0x79   : > { %365 = vmatpush.msra.mxu0 %v339_v16  ;;  %388 = vmatpush.msra.mxu1 %v340_v17 }
  0x7a   : > { %631 = vmatpush.msra.mxu2 %v337_v18  ;;  %647 = vmatpush.msra.mxu3 %v338_v19 }
  0x7b   : > { %366 = vmatpush.msra.mxu0 %v337_v18  ;;  %389 = vmatpush.msra.mxu1 %v338_v19 }
  0x7c   : > { %632 = vmatpush.msra.mxu2 %v335_v20  ;;  %648 = vmatpush.msra.mxu3 %v336_v21 }
  0x7d   : > { %367 = vmatpush.msra.mxu0 %v335_v20  ;;  %390 = vmatpush.msra.mxu1 %v336_v21 }
  0x7e   : > { %633 = vmatpush.msra.mxu2 %v333_v22  ;;  %649 = vmatpush.msra.mxu3 %v334_v23 }
  0x7f   : > { %368 = vmatpush.msra.mxu0 %v333_v22  ;;  %391 = vmatpush.msra.mxu1 %v334_v23 }
  0x80   : > { %634 = vmatpush.msra.mxu2 %v331_v24  ;;  %650 = vmatpush.msra.mxu3 %v332_v25 }
  0x81   : > { %369 = vmatpush.msra.mxu0 %v331_v24  ;;  %392 = vmatpush.msra.mxu1 %v332_v25 }
  0x82   : > { %635 = vmatpush.msra.mxu2 %v329_v26  ;;  %651 = vmatpush.msra.mxu3 %v330_v27 }
  0x83   : > { %370 = vmatpush.msra.mxu0 %v329_v26  ;;  %393 = vmatpush.msra.mxu1 %v330_v27 }
  0x84   : > { %636 = vmatpush.msra.mxu2 %v327_v28  ;;  %652 = vmatpush.msra.mxu3 %v328_v29 }
  0x85   : > { %371 = vmatpush.msra.mxu0 %v327_v28  ;;  %394 = vmatpush.msra.mxu1 %v328_v29 }
  0x86   : > { %637 = vmatpush.msra.mxu2 %v325_v30  ;;  %653 = vmatpush.msra.mxu3 %v326_v31 }
  0x87   : > { %376 = vmatmul.f32.vlgmr.msra.gmra.mxu2 %v324_v32  ;;  %399 = vmatmul.f32.vlgmr.msra.gmra.mxu3 %v324_v32 }
  0x88   : > { %372 = vmatpush.msra.mxu0 %v325_v30  ;;  %395 = vmatpush.msra.mxu1 %v326_v31 }
  0x89   : > { %373 = vmatmul.f32.vlgmr.msra.gmra.mxu0 %v323_v33  ;;  %396 = vmatmul.f32.vlgmr.msra.gmra.mxu1 %v323_v33 }
 0x106   : > { %v374_v37 = vpop.f32.mrf.mxu0  ;;  %v397_v38 = vpop.f32.mrf.mxu1 }
 0x107   : > { %v424_v39 = vadd.f32 %v420_v35, %v374_v37  ;;  %v425_v40 = vadd.f32 %v421_v36, %v397_v38 }
 0x109   : > { %428 = vst [vmem:[%s293_s9] sm:$0xff] %v424_v39 }
 0x10a   : > { %v377_v41 = vpop.f32.mrf.mxu2  ;;  %429 = vst [vmem:[%s293_s9 + $0x8] sm:$0xff] %v425_v40  ;;  %v400_v42 = vpop.f32.mrf.mxu3  ;;  %439 = sbr.rel (!%p1021_p9) target bundleno = 303 (0x12f), region = 56 }
 0x10b   : > { %v426_v43 = vadd.f32 %v420_v35, %v377_v41  ;;  %v427_v44 = vadd.f32 %v421_v36, %v400_v42 }
 0x10d   : > { %430 = vst [vmem:[%s293_s9 + $0x10] sm:$0xff] %v426_v43 }
 0x10e   : > { %431 = vst [vmem:[%s293_s9 + $0x18] sm:$0xff] %v427_v44 }
 0x10f   : > { %s1263_s23 = smov (!%p443_p5, %s442_s23), 2 }
 0x110   : > { %s608_s7 = sshll.u32 %s1263_s23, 4 }
 0x111   : > { %s446_s5 = ssub.s32 32, %s608_s7 }
 0x112   : > { %s447_s20 = sshll.u32 %s446_s5, 4 }
 0x113   : > { %448 = vsyncadd %s433_s11, %s447_s20  ;;  %p1164_p8 = scmp.ne.s32.totalorder %s608_s7, 0  ;;  %s619_s21 = sshll.u32 %s924_s15, 4 }
 0x114   : > { %s453_s27 = scalar_lea.hbm %s1228_s3, %s619_s21  ;;  %s611_s19 = sshll.u32 %s1263_s23, 3 }
 0x115   : > { %s456_s0 = sshll.u32 %s293_s9, 4  ;;  %s458_s22 = sshll.u32 %s453_s27, 4  ;;  %s1173_s0 = int_to_ptr.vmem [resolvable:$true] %s456_s0  ;;  %s1175_s22 = int_to_ptr.hbm [resolvable:$true] %s458_s22 }
 0x116   : > { %s621_s26 = sshll.u32 %s1263_s23, 8  ;;  %s835_s6 = sshra.s32 %s1173_s0, 4  ;;  %s836_s6 = int_to_ptr.vmem [resolvable:$true] %s835_s6 }
 0x117   : > { %s837_s28 = sshrl.u32 %s621_s26, 4  ;;  %s941_s15 = smov [#allocation9]  }
 0x118   : > { %s842_s18 = scalar_lea.vmem %s836_s6, %s837_s28  ;;  %s846_s24 = scalar_lea.vmem %s941_s15, 64 }
 0x119   : > { %p843_p9 = scmp.ne.s32.totalorder %s836_s6, %s842_s18  ;;  %p848_p4 = scmp.lt.s32.totalorder %s846_s24, %s842_s18 }
 0x11b   : > { %p844_p0 = pnand %p843_p9, %p1164_p8 }
 0x11d   : > { %p845_p3 = pneg %p844_p0 }
 0x11f   : > { %p850_p13 = pnand %p848_p4, %p845_p3 }
 0x121   : > { %853 = shalt.err (!%p850_p13)
}
 0x122   : > { %s854_s4 = sshra.s32 %s1175_s22, 4  ;;  %s865_s5 = scalar_lea.hbm %s1228_s3, 48  ;;  %s855_s4 = int_to_ptr.hbm [resolvable:$true] %s854_s4 }
 0x123   : > { %s861_s9 = scalar_lea.hbm %s855_s4, %s837_s28  ;;  %p866_p7 = scmp.lt.s32.totalorder %s855_s4, %s1228_s3 }
 0x124   : > { %p862_p1 = scmp.ne.s32.totalorder %s855_s4, %s861_s9  ;;  %p867_p10 = scmp.lt.s32.totalorder %s865_s5, %s861_s9 }
 0x126   : > { %p863_p2 = pnand %p862_p1, %p1164_p8  ;;  %p868_p12 = por %p867_p10, %p866_p7 }
 0x128   : > { %p864_p6 = pneg %p863_p2 }
 0x12a   : > { %p869_p5 = pnand %p868_p12, %p864_p6 }
 0x12c   : > { %872 = shalt.err (!%p869_p5)
}
 0x12d   : > { %s942_s8 = smov 256   ;;  %s943_s10 = smov 384  }
 0x12e   : > { %464 = dma.vmem_to_hbm [thread:$0]  (%p1164_p8), %s1173_s0, %s621_s26, %s1175_s22, %s433_s11, %s942_s8, %s943_s10, %s611_s19  }
 0x12f PF: > { %s473_s6 = sand.u32 1, %s912_s12   ;;  %p1248_p9 = scmp.ge.s32.totalorder %s932_s17, 2 }
 0x130   : > { %s474_s28 = scalar_lea.sflag [#allocation5], %s473_s6 }
 0x131   : > { %p666_p0 = pnand %p1248_p9, %p1028_p11 }
 0x133   : > { %p667_p3 = pneg %p666_p0 }
 0x135   : > { %907 = dma.done.wait (%p667_p3), %s474_s28, 512  }
 0x136   : > { %909 = vsyncadd (%p667_p3), %s474_s28, 4294966784  ;;  %s20_s17 = sadd.s32 1, %s932_s17   ;;  %s1249_s30 = sld [smem:[#allocation14_spill]] }
 0x137   : > { %p17_p4 = scmp.ge.s32.totalorder %s20_s17, 4   ;;  %s1250_s11 = sld [smem:[#allocation13_spill]] }
 0x138   : > { %s1251_s12 = smov %s916_s13  ;;  %s1252_s13 = smov %s920_s14 }
 0x139   : > { %s1254_s15 = smov %s928_s16  ;;  %19 = sbr.rel (!%p17_p4) target bundleno = 9 (0x9), region = 102 }
 0x13c   : > { %s1253_s14 = smov %s1249_s30 }
 0x13d   : > { %s1255_s16 = smov %s1250_s11 }
 0x13e   :  { %480 = vsyncpa [#allocation4], 1 }
 0x13f   :  { %482 = vsyncpa [#allocation4 + $0x1], 1 }
 0x140   :  { %483 = vsyncpa [#allocation7], 1 }
 0x141   :  { %485 = vsyncpa [#allocation7 + $0x1], 1 }
 0x142   :  { %486 = vsyncpa [#allocation5], 1 }
 0x143   :  { %488 = vsyncpa [#allocation5 + $0x1], 1 }

</bundles_post_ra>
